<compile_context>
chip_gen: v5e
topology: v5e:2x2
jax: 0.10.0
libtpu: 0.0.40
codegen_flags: <defaults>
</compile_context>

<pallas_src>
import jax
import jax.numpy as jnp
from jax.experimental import pallas as pl
from jax.experimental.pallas import tpu as pltpu


def _round_up(x, m):
    return (x + m - 1) // m * m


def _cdiv(a, b):
    return -(-a // b)


def _mlp_kernel(x_ref, w1_ref, b1_ref, w2_ref, b2_ref, o_ref):
    # Layer 1 on the MXU, f32 operands, f32 accumulation.
    h = jnp.dot(x_ref[...], w1_ref[...], preferred_element_type=jnp.float32)
    # Bias + ReLU on the VPU (f32).
    h = jnp.maximum(h + b1_ref[...], 0.0)
    # Layer 2: narrow (out_size-wide) result; masked stores into VMEM are cheap
    # and the kernel is HBM-bound, so the small N costs nothing.
    out = jnp.dot(h, w2_ref[...], preferred_element_type=jnp.float32)
    o_ref[...] = (out + b2_ref[...]).astype(o_ref.dtype)


def prepare_params(w1, b1, w2, b2):
    """Pad/cast Linear_QNet parameters ONCE (init time, not per forward call).

    w1: (input_size, hidden_size)   (transposed nn.Linear weight)
    b1: (1, hidden_size)
    w2: (hidden_size, output_size)  (transposed nn.Linear weight)
    b2: (1, output_size)
    """
    in_size, hidden = w1.shape
    out_size = w2.shape[1]
    IN_P = _round_up(in_size, 8)     # sublane-aligned contraction dim for layer 1
    H_P = _round_up(hidden, 128)     # lane-dense hidden (zero cols -> relu(0+0)=0)
    f32 = jnp.float32
    w1p = jnp.zeros((IN_P, H_P), f32).at[:in_size, :hidden].set(w1.astype(f32))
    b1p = jnp.zeros((1, H_P), f32).at[:, :hidden].set(b1.astype(f32))
    # Contraction (hidden) padded; output columns deliberately NOT padded.
    w2p = jnp.zeros((H_P, out_size), f32).at[:hidden, :].set(w2.astype(f32))
    b2p = b2.astype(f32).reshape(1, out_size)
    return w1p, b1p, w2p, b2p


def linear_qnet_forward(x, w1p, b1p, w2p, b2p, *, tb_max=1024):
    """Fused two-layer MLP forward (Linear -> ReLU -> Linear), f32 end-to-end.

    x: (B, input_size) float32; params from prepare_params().
    returns: (B, output_size) float32
    """
    B, in_size = x.shape
    IN_P, H_P = w1p.shape
    out_size = w2p.shape[1]
    f32 = jnp.float32

    # Balanced batch tiling: tiles of ~B/n_tiles rows (rounded to 8), with >= 2
    # grid steps whenever B allows so v7x's second TensorCore gets work and the
    # x/out tiles double-buffer.  For tiny B this collapses to one 8-row tile.
    n_tiles = _cdiv(B, tb_max)
    if B > 8:
        n_tiles = max(n_tiles, 2)
    TB = _round_up(_cdiv(B, n_tiles), 8)
    B_P = _round_up(B, TB)
    grid = (B_P // TB,)

    # Single pad op (batch rows + a few zero feature columns); fuses under jit.
    xp = jnp.pad(x.astype(f32), ((0, B_P - B), (0, IN_P - in_size)))

    flops = 2 * B_P * (IN_P * H_P + H_P * out_size)
    bytes_accessed = 4 * (xp.size + w1p.size + b1p.size + w2p.size + b2p.size
                          + B_P * out_size)

    out_padded = pl.pallas_call(
        _mlp_kernel,
        out_shape=jax.ShapeDtypeStruct((B_P, out_size), f32),
        grid_spec=pl.GridSpec(
            grid=grid,
            in_specs=[
                # x: tiled along batch, double-buffered by the BlockSpec pipeline.
                pl.BlockSpec((TB, IN_P), lambda i: (i, 0)),
                # Weights + biases: same block every step -> VMEM-resident.
                pl.BlockSpec((IN_P, H_P), lambda i: (0, 0)),
                pl.BlockSpec((1, H_P), lambda i: (0, 0)),
                pl.BlockSpec((H_P, out_size), lambda i: (0, 0)),
                pl.BlockSpec((1, out_size), lambda i: (0, 0)),
            ],
            # Narrow output: last dim equals the full array dim, so this is legal
            # and cuts the output HBM write ~40x vs 128-padded f32.
            out_specs=pl.BlockSpec((TB, out_size), lambda i: (i, 0)),
        ),
        compiler_params=pltpu.CompilerParams(
            dimension_semantics=("parallel",),   # shard batch across TCs on v7x
        ),
        cost_estimate=pl.CostEstimate(
            flops=flops, transcendentals=0, bytes_accessed=bytes_accessed),
    )(xp, w1p, b1p, w2p, b2p)

    return out_padded[:B]


if __name__ == "__main__":
    # Module config consistent with the snake-AI Q-net, kept small:
    input_size, hidden_size, output_size = 11, 32, 3
    batch = 2

    key = jax.random.PRNGKey(0)
    kx, kx2, k1, kb1, k2, kb2 = jax.random.split(key, 6)

    # Deterministic init (mimics PyTorch Linear uniform(-1/sqrt(fan_in), ...)).
    bound1 = 1.0 / jnp.sqrt(jnp.float32(input_size))
    bound2 = 1.0 / jnp.sqrt(jnp.float32(hidden_size))
    w1 = jax.random.uniform(k1, (input_size, hidden_size), jnp.float32, -bound1, bound1)
    b1 = jax.random.uniform(kb1, (1, hidden_size), jnp.float32, -bound1, bound1)
    w2 = jax.random.uniform(k2, (hidden_size, output_size), jnp.float32, -bound2, bound2)
    b2 = jax.random.uniform(kb2, (1, output_size), jnp.float32, -bound2, bound2)

    # Pad/cast parameters exactly once (init time), not per forward call.
    params = prepare_params(w1, b1, w2, b2)

    fwd = jax.jit(linear_qnet_forward)

    def ref_forward(xi):
        return jnp.maximum(xi @ w1 + b1, 0.0) @ w2 + b2

    # Small batch (grid collapses to a single 8-row tile).
    x = jax.random.uniform(kx, (batch, input_size), jnp.float32)
    out = jax.block_until_ready(fwd(x, *params))
    assert out.shape == (batch, output_size)
    assert jnp.allclose(out, ref_forward(x), atol=1e-3, rtol=1e-3), \
        "small-batch mismatch vs pure-JAX f32 reference"

    # Larger batch exercising the multi-step grid / masked last tile.
    batch2 = 300
    x2 = jax.random.uniform(kx2, (batch2, input_size), jnp.float32)
    out2 = jax.block_until_ready(fwd(x2, *params))
    assert out2.shape == (batch2, output_size)
    assert jnp.allclose(out2, ref_forward(x2), atol=1e-3, rtol=1e-3), \
        "large-batch mismatch vs pure-JAX f32 reference"

    print("KERNEL_OK")
</pallas_src>

<mosaic_0001>
module attributes {stable_mosaic.version = 11 : i64} {
  func.func @_mlp_kernel(%arg0: i32, %arg1: memref<8x16xf32, #tpu.memory_space<vmem>>, %arg2: memref<16x128xf32, #tpu.memory_space<vmem>>, %arg3: memref<1x128xf32, #tpu.memory_space<vmem>>, %arg4: memref<128x3xf32, #tpu.memory_space<vmem>>, %arg5: memref<1x3xf32, #tpu.memory_space<vmem>>, %arg6: memref<8x3xf32, #tpu.memory_space<vmem>>) attributes {dimension_semantics = [#tpu.dimension_semantics<parallel>], iteration_bounds = array<i64: 1>, scalar_prefetch = 0 : i64, scratch_operands = 0 : i64, tpu.core_type = #tpu.core_type<tc>, window_params = [{transform_indices = @transform_0, window_bounds = array<i64: 8, 16>}, {pipeline_mode = #tpu.pipeline_mode<synchronous>, transform_indices = @transform_1, window_bounds = array<i64: 16, 128>}, {pipeline_mode = #tpu.pipeline_mode<synchronous>, transform_indices = @transform_2, window_bounds = array<i64: 1, 128>}, {pipeline_mode = #tpu.pipeline_mode<synchronous>, transform_indices = @transform_3, window_bounds = array<i64: 128, 3>}, {pipeline_mode = #tpu.pipeline_mode<synchronous>, transform_indices = @transform_4, window_bounds = array<i64: 1, 3>}, {transform_indices = @transform_5, window_bounds = array<i64: 8, 3>}]} {
    %c0 = arith.constant 0 : index
    %c0_0 = arith.constant 0 : index
    %0 = vector.load %arg1[%c0, %c0_0] : memref<8x16xf32, #tpu.memory_space<vmem>>, vector<8x16xf32>
    %c0_1 = arith.constant 0 : index
    %c0_2 = arith.constant 0 : index
    %1 = vector.load %arg2[%c0_1, %c0_2] : memref<16x128xf32, #tpu.memory_space<vmem>>, vector<16x128xf32>
    %cst = arith.constant dense<0.000000e+00> : vector<8x128xf32>
    %2 = tpu.matmul %0, %1, %cst {dimension_numbers = #tpu.dot_dimension_numbers<[1], [0], [0], [1], [0, 0, 1, 1], [], []>} : vector<8x16xf32>, vector<16x128xf32>, vector<8x128xf32> -> vector<8x128xf32>
    %c0_3 = arith.constant 0 : index
    %c0_4 = arith.constant 0 : index
    %3 = vector.load %arg3[%c0_3, %c0_4] : memref<1x128xf32, #tpu.memory_space<vmem>>, vector<1x128xf32>
    %4 = vector.broadcast %3 : vector<1x128xf32> to vector<8x128xf32>
    %5 = arith.addf %2, %4 : vector<8x128xf32>
    %cst_5 = arith.constant 0.000000e+00 : f32
    %6 = vector.broadcast %cst_5 : f32 to vector<8x128xf32>
    %7 = arith.maximumf %5, %6 : vector<8x128xf32>
    %c0_6 = arith.constant 0 : index
    %c0_7 = arith.constant 0 : index
    %8 = vector.load %arg4[%c0_6, %c0_7] : memref<128x3xf32, #tpu.memory_space<vmem>>, vector<128x3xf32>
    %cst_8 = arith.constant dense<0.000000e+00> : vector<8x3xf32>
    %9 = tpu.matmul %7, %8, %cst_8 {dimension_numbers = #tpu.dot_dimension_numbers<[1], [0], [0], [1], [0, 0, 1, 1], [], []>} : vector<8x128xf32>, vector<128x3xf32>, vector<8x3xf32> -> vector<8x3xf32>
    %c0_9 = arith.constant 0 : index
    %c0_10 = arith.constant 0 : index
    %10 = vector.load %arg5[%c0_9, %c0_10] : memref<1x3xf32, #tpu.memory_space<vmem>>, vector<1x3xf32>
    %11 = vector.broadcast %10 : vector<1x3xf32> to vector<8x3xf32>
    %12 = arith.addf %9, %11 : vector<8x3xf32>
    %c0_11 = arith.constant 0 : index
    %c0_12 = arith.constant 0 : index
    %13 = vector.load %arg6[%c0_11, %c0_12] : memref<8x3xf32, #tpu.memory_space<vmem>>, vector<8x3xf32>
    tpu.vector_store %arg6[%c0_11, %c0_12], %12 {strides = array<i32>} : memref<8x3xf32, #tpu.memory_space<vmem>>, vector<8x3xf32>,
    return
  }
  func.func @transform_0(%arg0: i32) -> (i32, i32) {
    %c0_i32 = arith.constant 0 : i32
    %c0_i32_0 = arith.constant 0 : i32
    return %arg0, %c0_i32 : i32, i32
  }
  func.func @transform_1(%arg0: i32) -> (i32, i32) {
    %c0_i32 = arith.constant 0 : i32
    %c0_i32_0 = arith.constant 0 : i32
    %c0_i32_1 = arith.constant 0 : i32
    return %c0_i32, %c0_i32_0 : i32, i32
  }
  func.func @transform_2(%arg0: i32) -> (i32, i32) {
    %c0_i32 = arith.constant 0 : i32
    %c0_i32_0 = arith.constant 0 : i32
    %c0_i32_1 = arith.constant 0 : i32
    return %c0_i32, %c0_i32_0 : i32, i32
  }
  func.func @transform_3(%arg0: i32) -> (i32, i32) {
    %c0_i32 = arith.constant 0 : i32
    %c0_i32_0 = arith.constant 0 : i32
    %c0_i32_1 = arith.constant 0 : i32
    return %c0_i32, %c0_i32_0 : i32, i32
  }
  func.func @transform_4(%arg0: i32) -> (i32, i32) {
    %c0_i32 = arith.constant 0 : i32
    %c0_i32_0 = arith.constant 0 : i32
    %c0_i32_1 = arith.constant 0 : i32
    return %c0_i32, %c0_i32_0 : i32, i32
  }
  func.func @transform_5(%arg0: i32) -> (i32, i32) {
    %c0_i32 = arith.constant 0 : i32
    %c0_i32_0 = arith.constant 0 : i32
    return %arg0, %c0_i32 : i32, i32
  }
}

</mosaic_0001>

<bundles_post_ra>
// kernel: linear_qnet_forward.1
= control target key start
LH: loop header
LB: loop body
LE: loop exit
PB: predicated region body
PF: predicated region fallthrough
CT: control target
= control target key end

     0   :  { %vm27_vm0 = vcmask 130048   ;;  %vm92_vm1 = vcmask 23552   ;;  %s197_s1 = inlined_call_operand.vmem [shape: f32[16,128], index: 1, kind: input, shape index: {}]   ;;  %s198_s0 = inlined_call_operand.vmem [shape: f32[8,16], index: 0, kind: input, shape index: {}]   ;;  %s199_s3 = inlined_call_operand.vmem [shape: f32[128,3], index: 3, kind: input, shape index: {}]   ;;  %s200_s2 = inlined_call_operand.vmem [shape: f32[1,128], index: 2, kind: input, shape index: {}]   ;;  %s201_s4 = inlined_call_operand.vmem [shape: f32[1,3], index: 4, kind: input, shape index: {}]   ;;  %s202_s5 = inlined_call_operand.vmem [shape: f32[8,3], index: 5, kind: output, shape index: {}]  }
   0x1   :  { %v22_v0 = vld [vmem:[%s197_s1 + $0x8] sm:$0xff]  ;;  %v21_v1 = vld [vmem:[%s197_s1] sm:$0xff]  ;;  %v67_v3 = vld [vmem:[%s199_s3 + $0x78] sm:$0xff] }
   0x2   :  { %45 = vmatpush.msra.mxu0 %v22_v0  ;;  %v20_v2 = vld [vmem:[%s198_s0] sm:$0xff]  ;;  %v66_v4 = vld [vmem:[%s199_s3 + $0x70] sm:$0xff]  ;;  %72 = vmatpush.msra.mxu1 %v67_v3  ;;  %v65_v5 = vld [vmem:[%s199_s3 + $0x68] sm:$0xff] }
   0x3   :  { %v64_v6 = vld [vmem:[%s199_s3 + $0x60] sm:$0xff]  ;;  %v63_v7 = vld [vmem:[%s199_s3 + $0x58] sm:$0xff]  ;;  %v62_v8 = vld [vmem:[%s199_s3 + $0x50] sm:$0xff] }
   0x4   :  { %46 = vmatpush.msra.mxu0 %v21_v1  ;;  %73 = vmatpush.msra.mxu1 %v66_v4  ;;  %v61_v9 = vld [vmem:[%s199_s3 + $0x48] sm:$0xff]  ;;  %v60_v10 = vld [vmem:[%s199_s3 + $0x40] sm:$0xff]  ;;  %v59_v11 = vld [vmem:[%s199_s3 + $0x38] sm:$0xff] }
   0x5   :  { %98 = vmatmul.msk.f32.vlgmr.msra.gmra.mxu0 %vm27_vm0, %v20_v2  ;;  %v58_v12 = vld [vmem:[%s199_s3 + $0x30] sm:$0xff]  ;;  %v57_v13 = vld [vmem:[%s199_s3 + $0x28] sm:$0xff]  ;;  %v56_v14 = vld [vmem:[%s199_s3 + $0x20] sm:$0xff] }
   0x6   :  { %74 = vmatpush.msra.mxu1 %v65_v5  ;;  %v55_v15 = vld [vmem:[%s199_s3 + $0x18] sm:$0xff]  ;;  %v54_v16 = vld [vmem:[%s199_s3 + $0x10] sm:$0xff]  ;;  %v53_v17 = vld [vmem:[%s199_s3 + $0x8] sm:$0xff] }
   0x7   :  { %v52_v18 = vld [vmem:[%s199_s3] sm:$0xff] }
   0x8   :  { %75 = vmatpush.msra.mxu1 %v64_v6  ;;  %v99_v19 = vld [vmem:[%s200_s2] ss:$0 sm:$0xff] }
   0x9   :  { %v100_v23 = vld [vmem:[%s201_s4] ss:$0 sm:$0xff] }
   0xa   :  { %76 = vmatpush.msra.mxu1 %v63_v7 }
   0xc   :  { %77 = vmatpush.msra.mxu1 %v62_v8 }
   0xe   :  { %78 = vmatpush.msra.mxu1 %v61_v9 }
  0x10   :  { %79 = vmatpush.msra.mxu1 %v60_v10 }
  0x12   :  { %80 = vmatpush.msra.mxu1 %v59_v11 }
  0x14   :  { %81 = vmatpush.msra.mxu1 %v58_v12 }
  0x16   :  { %82 = vmatpush.msra.mxu1 %v57_v13 }
  0x18   :  { %83 = vmatpush.msra.mxu1 %v56_v14 }
  0x1a   :  { %84 = vmatpush.msra.mxu1 %v55_v15 }
  0x1c   :  { %85 = vmatpush.msra.mxu1 %v54_v16 }
  0x1e   :  { %86 = vmatpush.msra.mxu1 %v53_v17 }
  0x20   :  { %87 = vmatpush.msra.mxu1 %v52_v18 }
  0x82   :  { %v48_v20 = vpop.f32.mrf.mxu0 }
  0x83   :  { %v49_v21 = vadd.f32 %v99_v19, %v48_v20 }
  0x85   :  { %v51_v22 = vmax.f32 %v49_v21, 0.0 }
  0x87   :  { %88 = vmatmul.f32.vlgmr.msra.gmra.mxu1 %v51_v22 }
 0x104   :  { %v89_v24 = vpop.f32.mrf.mxu1 }
 0x105   :  { %v90_v25 = vadd.f32 %v100_v23, %v89_v24 }
 0x107   :  { %93 = vst.msk [vmem:[%s202_s5] sm:$0xff] %vm92_vm1, %v90_v25 }

</bundles_post_ra>
